<compile_context>
chip_gen: v7x
topology: tpu7x:2x2x1
jax: 0.10.0
libtpu: 0.0.40
codegen_flags: <defaults>
</compile_context>

<pallas_src>
import math
import functools

import jax
import jax.numpy as jnp
from jax.experimental import pallas as pl
from jax.experimental.pallas import tpu as pltpu


def _unit2d_kernel(x_ref, w_ref, scale_ref, shift_ref, y_ref, *, V, K):
    """One sample: fused K-tap temporal conv + folded (bias+BN) + ReLU.

    x_ref:     (Cin, (T_out + K - 1) * V)  bf16, zero-padded along T, lane-dense
    w_ref:     (K, Cout, Cin)              bf16 conv weights (tap-major)
    scale_ref: (Cout, 1)                   f32  gamma / sqrt(running_var + eps)
    shift_ref: (Cout, 1)                   f32  beta + (bias - running_mean) * scale
    y_ref:     (Cout, T_out * V)           f32 output slab (lane-dense)
    """
    x = x_ref[...]                                   # (Cin, L_in) bf16
    l_out = y_ref.shape[1]
    acc = jnp.zeros(y_ref.shape, jnp.float32)
    for k in range(K):                               # K is small & static
        xk = x[:, k * V: k * V + l_out]              # lane-shifted window (Cin, L_out)
        acc = acc + jnp.dot(w_ref[k], xk,
                            preferred_element_type=jnp.float32)
    y = acc * scale_ref[...] + shift_ref[...]        # folded conv-bias + eval BN
    y_ref[...] = jnp.maximum(y, 0.0).astype(y_ref.dtype)   # ReLU


def unit2d_forward(x, W, b, gamma, beta, run_mean, run_var, *,
                   kernel_size, stride=1, eps=1e-5):
    """x: (N, Cin, T, V) f32 (PyTorch NCHW); W: (Cout, Cin, K); b: (Cout,).

    Returns (N, Cout, T_out, V) f32.
    """
    if stride != 1:
        # TODO(synk): stride > 1 (temporal subsampling) not implemented.
        raise NotImplementedError("stride > 1 not implemented")

    N, Cin, T, V = x.shape
    Cout, _, K = W.shape
    assert K == kernel_size
    pad = (K - 1) // 2
    T_pad = T + 2 * pad
    T_out = T_pad - K + 1
    L_in = T_pad * V
    L_out = T_out * V

    # TODO(synk): only eval-mode is implemented (Dropout = identity,
    # SyncBatchNorm uses running statistics); the dim=3 variant (conv over V)
    # is not implemented.

    xp = x if pad == 0 else jnp.pad(x, ((0, 0), (0, 0), (pad, pad), (0, 0)))
    x_flat = xp.reshape(N, Cin, L_in).astype(jnp.bfloat16)     # free reshape + bf16
    w_koc = jnp.transpose(W, (2, 0, 1)).astype(jnp.bfloat16)   # (K, Cout, Cin), tiny

    # Fold conv bias + eval-mode BN into one per-channel scale/shift.
    inv_std = 1.0 / jnp.sqrt(run_var + eps)
    scale = (gamma * inv_std).reshape(Cout, 1).astype(jnp.float32)
    shift = (beta + (b - run_mean) * gamma * inv_std).reshape(Cout, 1)
    shift = shift.astype(jnp.float32)

    kernel = functools.partial(_unit2d_kernel, V=V, K=K)

    y_flat = pl.pallas_call(
        kernel,
        out_shape=jax.ShapeDtypeStruct((N, Cout, L_out), jnp.float32),
        grid_spec=pltpu.PrefetchScalarGridSpec(
            num_scalar_prefetch=0,
            grid=(N,),
            in_specs=[
                pl.BlockSpec((None, Cin, L_in), lambda n: (n, 0, 0)),
                pl.BlockSpec((K, Cout, Cin), lambda n: (0, 0, 0)),
                pl.BlockSpec((Cout, 1), lambda n: (0, 0)),
                pl.BlockSpec((Cout, 1), lambda n: (0, 0)),
            ],
            out_specs=pl.BlockSpec((None, Cout, L_out), lambda n: (n, 0, 0)),
        ),
        compiler_params=pltpu.CompilerParams(
            dimension_semantics=("parallel",)),
    )(x_flat, w_koc, scale, shift)

    return y_flat.reshape(N, Cout, T_out, V)       # free reshape back to NCHW


def reference_forward(x, W, b, gamma, beta, run_mean, run_var, *,
                      kernel_size, eps=1e-5):
    """Pure-JAX (f32) reference mirroring the PyTorch eval-mode forward."""
    K = kernel_size
    pad = (K - 1) // 2
    xp = jnp.pad(x, ((0, 0), (0, 0), (pad, pad), (0, 0)))
    T_out = xp.shape[2] - K + 1
    y = jnp.zeros((x.shape[0], W.shape[0], T_out, x.shape[3]), jnp.float32)
    for k in range(K):
        y = y + jnp.einsum('oc,nctv->notv', W[:, :, k], xp[:, :, k:k + T_out, :])
    y = y + b[None, :, None, None]
    scale = gamma / jnp.sqrt(run_var + eps)
    y = (y - run_mean[None, :, None, None]) * scale[None, :, None, None] \
        + beta[None, :, None, None]
    return jnp.maximum(y, 0.0)


if __name__ == "__main__":
    # Small shapes consistent with the module: Unit2D(D_in=4, D_out=8, kernel_size=3)
    # applied to x of shape (N, C, T, V) = (2, 4, 16, 16).  T_out*V = 256 lanes.
    N, C_in, C_out, T, V = 2, 4, 8, 16, 16
    kernel_size, stride = 3, 1

    key = jax.random.PRNGKey(0)
    k_x, k_w, k_b = jax.random.split(key, 3)

    x = jax.random.normal(k_x, (N, C_in, T, V), dtype=jnp.float32)

    # conv_init: weight ~ N(0, sqrt(2 / (out_channels * prod(kernel_size)))).
    n_fan = C_out * kernel_size * 1
    W = jax.random.normal(k_w, (C_out, C_in, kernel_size), dtype=jnp.float32) \
        * math.sqrt(2.0 / n_fan)
    # Conv2d default bias init: U(-1/sqrt(fan_in), 1/sqrt(fan_in)), fan_in = Cin*K*1.
    bound = 1.0 / math.sqrt(C_in * kernel_size * 1)
    b = jax.random.uniform(k_b, (C_out,), dtype=jnp.float32,
                           minval=-bound, maxval=bound)

    # SyncBatchNorm(D_out) default params (eval mode -> running stats).
    gamma = jnp.ones((C_out,), jnp.float32)
    beta = jnp.zeros((C_out,), jnp.float32)
    run_mean = jnp.zeros((C_out,), jnp.float32)
    run_var = jnp.ones((C_out,), jnp.float32)

    y = unit2d_forward(x, W, b, gamma, beta, run_mean, run_var,
                       kernel_size=kernel_size, stride=stride)
    y = jax.block_until_ready(y)

    y_ref = reference_forward(x, W, b, gamma, beta, run_mean, run_var,
                              kernel_size=kernel_size)
    assert y.shape == (N, C_out, T, V)
    err = jnp.max(jnp.abs(y - y_ref))
    # bf16 matmul inputs with f32 accumulation -> relaxed tolerance vs f32 reference.
    assert jnp.allclose(y, y_ref, rtol=2e-2, atol=2e-2), \
        f"mismatch: max abs err {err}"

    print("KERNEL_OK")
</pallas_src>

<mosaic_0001>
module attributes {stable_mosaic.version = 11 : i64} {
  func.func @_unit2d_kernel(%arg0: i32, %arg1: memref<1x4x288xbf16, #tpu.memory_space<vmem>>, %arg2: memref<3x8x4xbf16, #tpu.memory_space<vmem>>, %arg3: memref<8x1xf32, #tpu.memory_space<vmem>>, %arg4: memref<8x1xf32, #tpu.memory_space<vmem>>, %arg5: memref<1x8x256xf32, #tpu.memory_space<vmem>>) attributes {dimension_semantics = [#tpu.dimension_semantics<parallel>], iteration_bounds = array<i64: 2>, scalar_prefetch = 0 : i64, scratch_operands = 0 : i64, tpu.core_type = #tpu.core_type<tc>, window_params = [{transform_indices = @transform_0, window_bounds = array<i64: 1, 4, 288>}, {pipeline_mode = #tpu.pipeline_mode<synchronous>, transform_indices = @transform_1, window_bounds = array<i64: 3, 8, 4>}, {pipeline_mode = #tpu.pipeline_mode<synchronous>, transform_indices = @transform_2, window_bounds = array<i64: 8, 1>}, {pipeline_mode = #tpu.pipeline_mode<synchronous>, transform_indices = @transform_3, window_bounds = array<i64: 8, 1>}, {transform_indices = @transform_4, window_bounds = array<i64: 1, 8, 256>}]} {
    %c0 = arith.constant 0 : index
    %c0_0 = arith.constant 0 : index
    %c0_1 = arith.constant 0 : index
    %0 = vector.load %arg1[%c0, %c0_0, %c0_1] : memref<1x4x288xbf16, #tpu.memory_space<vmem>>, vector<1x4x288xbf16>
    %1 = vector.shape_cast %0 : vector<1x4x288xbf16> to vector<4x288xbf16>
    %cst = arith.constant 0.000000e+00 : f32
    %2 = vector.broadcast %cst : f32 to vector<8x256xf32>
    %3 = vector.extract_strided_slice %1 {offsets = [0, 0], sizes = [4, 256], strides = [1, 1]} : vector<4x288xbf16> to vector<4x256xbf16>
    %c0_2 = arith.constant 0 : index
    %c0_3 = arith.constant 0 : index
    %c0_4 = arith.constant 0 : index
    %4 = vector.load %arg2[%c0_2, %c0_3, %c0_4] : memref<3x8x4xbf16, #tpu.memory_space<vmem>>, vector<1x8x4xbf16>
    %5 = vector.shape_cast %4 : vector<1x8x4xbf16> to vector<8x4xbf16>
    %cst_5 = arith.constant dense<0.000000e+00> : vector<8x256xf32>
    %6 = tpu.matmul %5, %3, %cst_5 {dimension_numbers = #tpu.dot_dimension_numbers<[1], [0], [0], [1], [0, 0, 1, 1], [], []>} : vector<8x4xbf16>, vector<4x256xbf16>, vector<8x256xf32> -> vector<8x256xf32>
    %7 = arith.addf %2, %6 : vector<8x256xf32>
    %8 = vector.extract_strided_slice %1 {offsets = [0, 16], sizes = [4, 256], strides = [1, 1]} : vector<4x288xbf16> to vector<4x256xbf16>
    %c1 = arith.constant 1 : index
    %c0_6 = arith.constant 0 : index
    %c0_7 = arith.constant 0 : index
    %9 = vector.load %arg2[%c1, %c0_6, %c0_7] : memref<3x8x4xbf16, #tpu.memory_space<vmem>>, vector<1x8x4xbf16>
    %10 = vector.shape_cast %9 : vector<1x8x4xbf16> to vector<8x4xbf16>
    %cst_8 = arith.constant dense<0.000000e+00> : vector<8x256xf32>
    %11 = tpu.matmul %10, %8, %cst_8 {dimension_numbers = #tpu.dot_dimension_numbers<[1], [0], [0], [1], [0, 0, 1, 1], [], []>} : vector<8x4xbf16>, vector<4x256xbf16>, vector<8x256xf32> -> vector<8x256xf32>
    %12 = arith.addf %7, %11 : vector<8x256xf32>
    %13 = vector.extract_strided_slice %1 {offsets = [0, 32], sizes = [4, 256], strides = [1, 1]} : vector<4x288xbf16> to vector<4x256xbf16>
    %c2 = arith.constant 2 : index
    %c0_9 = arith.constant 0 : index
    %c0_10 = arith.constant 0 : index
    %14 = vector.load %arg2[%c2, %c0_9, %c0_10] : memref<3x8x4xbf16, #tpu.memory_space<vmem>>, vector<1x8x4xbf16>
    %15 = vector.shape_cast %14 : vector<1x8x4xbf16> to vector<8x4xbf16>
    %cst_11 = arith.constant dense<0.000000e+00> : vector<8x256xf32>
    %16 = tpu.matmul %15, %13, %cst_11 {dimension_numbers = #tpu.dot_dimension_numbers<[1], [0], [0], [1], [0, 0, 1, 1], [], []>} : vector<8x4xbf16>, vector<4x256xbf16>, vector<8x256xf32> -> vector<8x256xf32>
    %17 = arith.addf %12, %16 : vector<8x256xf32>
    %c0_12 = arith.constant 0 : index
    %c0_13 = arith.constant 0 : index
    %18 = vector.load %arg3[%c0_12, %c0_13] : memref<8x1xf32, #tpu.memory_space<vmem>>, vector<8x1xf32>
    %19 = vector.broadcast %18 : vector<8x1xf32> to vector<8x256xf32>
    %20 = arith.mulf %17, %19 : vector<8x256xf32>
    %c0_14 = arith.constant 0 : index
    %c0_15 = arith.constant 0 : index
    %21 = vector.load %arg4[%c0_14, %c0_15] : memref<8x1xf32, #tpu.memory_space<vmem>>, vector<8x1xf32>
    %22 = vector.broadcast %21 : vector<8x1xf32> to vector<8x256xf32>
    %23 = arith.addf %20, %22 : vector<8x256xf32>
    %cst_16 = arith.constant 0.000000e+00 : f32
    %24 = vector.broadcast %cst_16 : f32 to vector<8x256xf32>
    %25 = arith.maximumf %23, %24 : vector<8x256xf32>
    %c0_17 = arith.constant 0 : index
    %c0_18 = arith.constant 0 : index
    %c0_19 = arith.constant 0 : index
    %26 = vector.load %arg5[%c0_17, %c0_18, %c0_19] : memref<1x8x256xf32, #tpu.memory_space<vmem>>, vector<1x8x256xf32>
    %27 = vector.shape_cast %26 : vector<1x8x256xf32> to vector<8x256xf32>
    %28 = vector.shape_cast %25 : vector<8x256xf32> to vector<1x8x256xf32>
    tpu.vector_store %arg5[%c0_17, %c0_18, %c0_19], %28 {strides = array<i32>} : memref<1x8x256xf32, #tpu.memory_space<vmem>>, vector<1x8x256xf32>,
    return
  }
  func.func @transform_0(%arg0: i32) -> (i32, i32, i32) {
    %c0_i32 = arith.constant 0 : i32
    %c0_i32_0 = arith.constant 0 : i32
    %c0_i32_1 = arith.constant 0 : i32
    return %arg0, %c0_i32, %c0_i32_0 : i32, i32, i32
  }
  func.func @transform_1(%arg0: i32) -> (i32, i32, i32) {
    %c0_i32 = arith.constant 0 : i32
    %c0_i32_0 = arith.constant 0 : i32
    %c0_i32_1 = arith.constant 0 : i32
    %c0_i32_2 = arith.constant 0 : i32
    return %c0_i32, %c0_i32_0, %c0_i32_1 : i32, i32, i32
  }
  func.func @transform_2(%arg0: i32) -> (i32, i32) {
    %c0_i32 = arith.constant 0 : i32
    %c0_i32_0 = arith.constant 0 : i32
    %c0_i32_1 = arith.constant 0 : i32
    return %c0_i32, %c0_i32_0 : i32, i32
  }
  func.func @transform_3(%arg0: i32) -> (i32, i32) {
    %c0_i32 = arith.constant 0 : i32
    %c0_i32_0 = arith.constant 0 : i32
    %c0_i32_1 = arith.constant 0 : i32
    return %c0_i32, %c0_i32_0 : i32, i32
  }
  func.func @transform_4(%arg0: i32) -> (i32, i32, i32) {
    %c0_i32 = arith.constant 0 : i32
    %c0_i32_0 = arith.constant 0 : i32
    %c0_i32_1 = arith.constant 0 : i32
    return %arg0, %c0_i32, %c0_i32_0 : i32, i32, i32
  }
}

</mosaic_0001>

<bundles_post_ra>
// kernel: tpu_custom_call.1
= control target key start
LH: loop header
LB: loop body
LE: loop exit
PB: predicated region body
PF: predicated region fallthrough
CT: control target
= control target key end

     0   :  { %9 = vsyncpa [#allocation3], 0  ;;  %s777_s0 = inlined_call_operand.vmem [shape: bf16[2,4,288], index: 0, kind: input, shape index: {}]   ;;  %s778_s1 = inlined_call_operand.vmem [shape: bf16[3,8,4], index: 1, kind: input, shape index: {}]   ;;  %s779_s2 = inlined_call_operand.vmem [shape: f32[8,1], index: 2, kind: input, shape index: {}]   ;;  %s780_s3 = inlined_call_operand.vmem [shape: f32[8,1], index: 3, kind: input, shape index: {}]   ;;  %s781_s4 = inlined_call_operand.hbm [shape: f32[2,8,256], index: 4, kind: output, shape index: {}]  }
   0x1   :  { %11 = vsyncpa [#allocation3 + $0x1], 0  ;;  %s653_s15 = smov 0   ;;  %s655_s16 = smov 0  }
   0x2   :  { %s657_s17 = smov 0   ;;  %s659_s18 = smov 0  }
   0x3 LB: > { %s674_s19 = sadd.s32 4294967295, %s621_s18   ;;  %s486_s20 = sadd.s32 4294967294, %s621_s18   ;;  %s621_s18 = sphi %s659_s18, %s787_s18   ;;  %s617_s17 = sphi %s657_s17, %s786_s17   ;;  %s613_s16 = sphi %s655_s16, %s785_s16   ;;  %s609_s15 = sphi %s653_s15, %s784_s15  }
   0x4   : > { %s678_s21 = sadd.s32 1, %s621_s18   ;;  %s113_s22 = sadd.s32 1, %s617_s17 }
   0x5   : > { %s110_s23 = ssub.s32 %s621_s18, %s678_s21  ;;  %p123_p0 = scmp.ne.s32.totalorder %s617_s17, %s613_s16 }
   0x6   : > { %p111_p1 = scmp.eq.s32.totalorder %s110_s23, 0  ;;  %p124_p2 = scmp.eq.s32.totalorder %s674_s19, 1 }
   0x7   : > { %p129_p3 = scmp.ne.s32.totalorder %s613_s16, %s609_s15  ;;  %p130_p4 = scmp.eq.s32.totalorder %s486_s20, 1 }
   0x8   : > { %s689_s24 = scalar_select %p111_p1, %s617_s17, %s113_s22  }
   0x9   : > { %p691_p5 = por %p124_p2, %p123_p0  ;;  %p695_p6 = por %p130_p4, %p129_p3 }
   0xa   : > { %p489_p7 = scmp.ge.s32.totalorder %s621_s18, 1  ;;  %p165_p8 = scmp.lt.s32.totalorder %s621_s18, 3 }
   0xc   : > { %p166_p9 = pnand %p489_p7, %p165_p8 }
   0xd   : > { %p191_p10 = scmp.lt.s32.totalorder (!%p166_p9), %s674_s19, 1  ;;  %v206_v0 = vlaneseq (!%p166_p9)  ;;  %v623_v1 = vmov (!%p166_p9), 1983009808   ;;  %v624_v3 = vmov (!%p166_p9), 0   ;;  %vm231_vm0 = vcmask (!%p166_p9), 1041408   ;;  %s625_s6 = smov (!%p166_p9), 96  }
   0xe   : > { %169 = sbr.rel (%p166_p9) target bundleno = 392 (0x188), region = 36  ;;  %v204_v2 = vunpack.c.l.s4 (!%p166_p9), %v623_v1  ;;  %320 = vmatprep.mubr.bf16.mxu0 (!%p166_p9), %v624_v3  ;;  %270 = vmatprep.mubr.bf16.mxu1 (!%p166_p9), %v624_v3  ;;  %s626_s7 = smov (!%p166_p9), 112   ;;  %v198_v13 = vld [vmem:[%s778_s1] sm:$0xf] (!%p166_p9)  ;;  %vm227_vm1 = vcmask (!%p166_p9), 31744   ;;  %vm224_vm2 = vcmask (!%p166_p9), 916480  }
   0xf   : > { %v207_v4 = vshrl.u32 (!%p166_p9), %v206_v0, 7  ;;  %556 = vset.pattern.permute.xlu0 (!%p166_p9), %v624_v3  ;;  %557 = vset.pattern.permute.xlu1 (!%p166_p9), %v624_v3  ;;  %v392_v14 = vld [vmem:[%s779_s2] sm:$0xff] (!%p166_p9)  ;;  %vm337_vm3 = vcmask (!%p166_p9), 785408   ;;  %v497_v29 = vld [vmem:[%s778_s1 + $0x8] sm:$0xf] (!%p166_p9)  ;;  %s505_s29 = sshll.u32 (!%p166_p9), %s674_s19, 8 }
  0x10   : > { %v205_v5 = vunpack.c.0.s8 (!%p166_p9), %v204_v2  ;;  %v400_v15 = vld [vmem:[%s780_s3] sm:$0xff] (!%p166_p9)  ;;  %s735_s8 = scalar_lea.hbm (!%p166_p9), %s781_s4, %s505_s29 }
  0x11   : > { %v492_v23 = vld [vmem:[%s778_s1 + $0x4] sm:$0xf] (!%p166_p9) }
  0x12   : > { %v208_v6 = vsub.s32 (!%p166_p9), %v205_v5, %v207_v4 }
  0x15   : > { %s192_s27 = scalar_select %p191_p10, %s674_s19, 1 }
  0x16   : > { %s627_s19 = smov [#allocation2]  }
  0x17   : > { %s512_s28 = smul.u32 6, %s192_s27  ;;  %s188_s27 = sand.u32 1, %s613_s16  }
  0x18   : > { %s413_s9 = scalar_lea.sflag [#allocation3], %s188_s27  ;;  %s563_s11 = sshll.u32 %s627_s19, 4  ;;  %s564_s11 = int_to_ptr.vmem [resolvable:$false] %s563_s11 }
  0x19   : > { %s195_s5 = scalar_lea.vmem %s777_s0, %s512_s28  ;;  %s490_s28 = sshll.u32 %s188_s27, 4 }
  0x1a   : > { %v197_v7 = vld [vmem:[%s195_s5] sm:$0x3f]  ;;  %s190_s30 = scalar_lea.vmem [#allocation2], %s490_s28  ;;  %s565_s12 = scalar_lea.vmem %s564_s11, 512 }
  0x1b   : > { %v209_v8 = vrot.slane %v197_v7, %v208_v6  ;;  %v202_v9 = vcombine.high %v197_v7, %v197_v7  ;;  %s427_s5 = sshll.u32 %s190_s30, 4  ;;  %s737_s5 = int_to_ptr.vmem [resolvable:$true] %s427_s5 }
  0x1c   : > { %s559_s10 = scalar_lea.vmem %s737_s5, 256  ;;  %p566_p0 = scmp.lt.s32.totalorder %s737_s5, %s564_s11 }
  0x1d   : > { %331 = vrot.lane.b32.xlu1 %v209_v8, %s625_s6  ;;  %218 = vrot.lane.b32.xlu0 %v209_v8, %s626_s7  ;;  %v217_v10 = vcombine.high %v209_v8, %v209_v8  ;;  %v216_v11 = vrot.slane %v202_v9, %v208_v6  ;;  %v283_v12 = vsel %vm231_vm0, %v209_v8, 0  ;;  %p560_p11 = scmp.ne.s32.totalorder %s737_s5, %s559_s10  ;;  %p567_p1 = scmp.lt.s32.totalorder %s565_s12, %s559_s10 }
  0x1f   : > { %495 = vmatprep.subr.msk.bf16.mxu0 %vm231_vm0, %v217_v10  ;;  %p561_p12 = pnand %p560_p11, %p691_p5  ;;  %p568_p2 = por %p567_p1, %p566_p0 }
  0x20   : > { %289 = vmatpush1.bf16.msra.mxu0 %v283_v12 }
  0x21   : > { %220 = vrot.lane.b32.xlu0 %v217_v10, %s626_s7  ;;  %222 = vrot.lane.b32.xlu1 %v216_v11, %s626_s7  ;;  %p562_p13 = pneg %p561_p12 }
  0x23   : > { %496 = vmatmul.mubr.msk.bf16.vlgmr.msra.gmra.mrb[0].mxu0 %vm227_vm1, %v198_v13  ;;  %p569_p3 = pnand %p568_p2, %p562_p13 }
  0x24   : > { %381 = vmatprep.mubr.bf16.mxu0 %v624_v3 }
  0x25   : > { %333 = vrot.lane.b32.xlu0 %v217_v10, %s625_s6  ;;  %335 = vrot.lane.b32.xlu1 %v216_v11, %s625_s6 }
  0x29   : > { %395 = vperm.xlu0 %556, %v392_v14   ;;  %403 = vperm.xlu1 %557, %v400_v15  }
  0x8f   : > { %v332_v16 = vpop.permute.xlu1 %331  ;;  %v219_v17 = vpop.permute.xlu0 %218 }
  0x93   : > { %v221_v18 = vpop.permute.xlu0 %220  ;;  %v223_v19 = vpop.permute.xlu1 %222 }
  0x94   : > { %v226_v20 = vsel %vm224_vm2, %v221_v18, %v223_v19  ;;  %v225_v21 = vsel %vm224_vm2, %v219_v17, %v221_v18 }
  0x95   : > { %493 = vmatprep.subr.msk.bf16.mxu1 %vm231_vm0, %v226_v20  ;;  %v233_v22 = vsel %vm231_vm0, %v225_v21, 0 }
  0x96   : > { %239 = vmatpush1.bf16.msra.mxu1 %v233_v22 }
  0x97   : > { %v334_v24 = vpop.permute.xlu0 %333  ;;  %v336_v25 = vpop.permute.xlu1 %335 }
  0x98   : > { %v338_v26 = vsel %vm337_vm3, %v332_v16, %v334_v24  ;;  %v339_v27 = vsel %vm337_vm3, %v334_v24, %v336_v25 }
  0x99   : > { %v344_v28 = vsel %vm231_vm0, %v338_v26, 0  ;;  %498 = vmatprep.subr.msk.bf16.mxu0 %vm231_vm0, %v339_v27  ;;  %494 = vmatmul.mubr.msk.bf16.vlgmr.msra.gmra.mrb[0].mxu1 %vm227_vm1, %v492_v23 }
  0x9a   : > { %350 = vmatpush1.bf16.msra.mxu0 %v344_v28 }
  0x9d   : > { %499 = vmatmul.mubr.msk.bf16.vlgmr.msra.gmra.mrb[0].mxu0 %vm227_vm1, %v497_v29 }
  0xa8   : > { %v396_v35 = vpop.permute.xlu0 %395  ;;  %v404_v40 = vpop.permute.xlu1 %403 }
 0x16c   : > { %v272_v30 = vpop.f32.mrb[0].mxu1 }
 0x16d   : > { %v274_v31 = vpop.f32.mrb[1].mxu1 }
 0x16e   : > { %v276_v32 = vpop.f32.mrb[2].mxu1 }
 0x16f   : > { %v277_v33 = vpop.f32.mrb[3].mxu1 }
 0x170   : > { %v383_v34 = vpop.f32.mrb[0].mxu0 }
 0x171   : > { %v506_v36 = vadd.f32 %v383_v34, %v272_v30  ;;  %v385_v37 = vpop.f32.mrb[1].mxu0 }
 0x172   : > { %v507_v38 = vadd.f32 %v385_v37, %v274_v31  ;;  %v387_v39 = vpop.f32.mrb[2].mxu0 }
 0x173   : > { %v398_v41 = vmul.f32 %v506_v36, %v396_v35  ;;  %v388_v42 = vpop.f32.mrb[3].mxu0 }
 0x174   : > { %v399_v43 = vmul.f32 %v507_v38, %v396_v35 }
 0x175   : > { %v406_v44 = vadd.f32 %v404_v40, %v398_v41 }
 0x176   : > { %v407_v45 = vadd.f32 %v404_v40, %v399_v43 }
 0x177   : > { %v408_v46 = vmax.f32 %v406_v44, 0.0 }
 0x178   : > { %v409_v47 = vmax.f32 %v407_v45, 0.0 }
 0x179   : > { %410 = vst [vmem:[%s190_s30] sm:$0xff] %v408_v46 }
 0x17a   : > { %411 = vst [vmem:[%s190_s30 + $0x8] sm:$0xff] %v409_v47 }
 0x17b   : > { %572 = shalt.err (!%p569_p3)
}
 0x17c   : > { %s573_s13 = scalar_lea.hbm %s735_s8, 256  ;;  %s577_s22 = scalar_lea.hbm %s781_s4, 512 }
 0x17d   : > { %p574_p4 = scmp.ne.s32.totalorder %s735_s8, %s573_s13  ;;  %p578_p9 = scmp.lt.u32.totalorder %s735_s8, %s781_s4 }
 0x17e   : > { %p579_p10 = scmp.lt.u32.totalorder %s577_s22, %s573_s13  ;;  %p581_p12 = scmp.lt.u32.totalorder %s573_s13, %s735_s8 }
 0x17f   : > { %p575_p7 = pnand %p574_p4, %p691_p5 }
 0x180   : > { %p580_p11 = por %p579_p10, %p578_p9 }
 0x181   : > { %p576_p8 = pneg %p575_p7 }
 0x182   : > { %p582_p13 = por %p581_p12, %p580_p11 }
 0x184   : > { %p583_p0 = pnand %p582_p13, %p576_p8 }
 0x186   : > { %586 = shalt.err (!%p583_p0)
}
 0x187   : > { %513 = dma.vmem_to_hbm [thread:$0]  (%p691_p5), %s737_s5, 256, %s735_s8, %s413_s9  }
 0x188 PF: > { %p519_p1 = scmp.ge.s32.totalorder %s621_s18, 2  ;;  %s439_s28 = sand.u32 1, %s609_s15  }
 0x189   : > { %s440_s29 = scalar_lea.sflag [#allocation3], %s439_s28 }
 0x18a   : > { %p516_p2 = pnand %p519_p1, %p695_p6 }
 0x18c   : > { %604 = dma.done.wait (!%p516_p2), %s440_s29, 256  }
 0x18d   : > { %606 = vsyncadd (!%p516_p2), %s440_s29, 4294967040  ;;  %p14_p3 = scmp.ge.s32.totalorder %s678_s21, 4   ;;  %s784_s15 = smov %s613_s16 }
 0x18e   : > { %s785_s16 = smov %s617_s17  ;;  %s786_s17 = smov %s689_s24 }
 0x18f   : > { %s787_s18 = smov %s678_s21  ;;  %16 = sbr.rel (!%p14_p3) target bundleno = 3 (0x3), region = 73 }
 0x196   :  { %445 = vsyncpa [#allocation3], 1 }
 0x197   :  { %447 = vsyncpa [#allocation3 + $0x1], 1 }

</bundles_post_ra>
